<compile_context>
chip_gen: v7x
topology: tpu7x:2x2x1
jax: 0.10.0
libtpu: 0.0.40
codegen_flags: <defaults>
</compile_context>

<pallas_src>
import math
from functools import partial

import jax
import jax.numpy as jnp
from jax.experimental import pallas as pl
from jax.experimental.pallas import tpu as pltpu

N_INPUT = 1        # module docstring: "leap frog only for DIM = 1"
N_HIDDEN = 32
N_STACK = 2
BATCH = 128        # one full f32 lane tile
TIME_STEP = 0.05

LANES = 128        # f32 vreg lane width
MAX_TILE = 1024    # lane-axis tile cap (beyond ~1024 lanes vreg spills start)
UNROLL_LIMIT = 16  # n_stack <= this -> full Python unroll inside the kernel


# --------------------------------------------------------------------------------------
# kernel
# --------------------------------------------------------------------------------------
def hnn_lf_kernel(qp_ref, mats_ref, cols_ref, qp_out_ref, *, n_stack):
    """Runs the whole n_stack leapfrog chain for one batch tile (batch on the lane axis).

    qp_ref   : (2, Nb)    row 0 = q, row 1 = p
    mats_ref : (4, H, H)  [W2_pot, (-dt)·diag(w1p)·W2_potᵀ·diag(w3p),
                           W2_kin, (+dt)·diag(w1k)·W2_kinᵀ·diag(w3k)]   (z = W @ x layout)
    cols_ref : (H, 6)     columns [w1, b1, b2] x {pot, kin}
    """
    H = cols_ref.shape[0]
    Nb = qp_ref.shape[1]

    q = qp_ref[0:1, :]                     # (1, Nb)
    p = qp_ref[1:2, :]                     # (1, Nb)

    # loop-invariant parameters, loaded once before the leapfrog chain
    w2f_pot = mats_ref[0]                  # (H, H) forward:  z2 = W2 @ h1
    w2b_pot = mats_ref[1]                  # (H, H) backward, pre-scaled by -dt, w1, w3
    w2f_kin = mats_ref[2]
    w2b_kin = mats_ref[3]                  # backward, pre-scaled by +dt, w1, w3

    # hoisted lane broadcasts (JAX does not CSE broadcast_in_dim across unrolled iterations)
    w1b_pot = jnp.broadcast_to(cols_ref[:, 0:1], (H, Nb))
    b1b_pot = jnp.broadcast_to(cols_ref[:, 1:2], (H, Nb))
    b2b_pot = jnp.broadcast_to(cols_ref[:, 2:3], (H, Nb))
    w1b_kin = jnp.broadcast_to(cols_ref[:, 3:4], (H, Nb))
    b1b_kin = jnp.broadcast_to(cols_ref[:, 4:5], (H, Nb))
    b2b_kin = jnp.broadcast_to(cols_ref[:, 5:6], (H, Nb))

    def grad_inc(x, w1b, b1b, w2f, b2b, w2b):
        # Analytic (±dt)·d(sum out)/dx of: out = W3 @ tanh(W2 @ tanh(W1 x + b1) + b2) + b3.
        # dt, sign, w1 and w3 are all folded into w2b on the host, so the final reduction
        # over H is a sublane sum (XLU) instead of a third serial MXU matvec.
        h1 = jnp.tanh(w1b * x + b1b)                                                   # (H, Nb)
        z2 = jnp.dot(w2f, h1, preferred_element_type=jnp.float32) + b2b                # MXU
        h2 = jnp.tanh(z2)
        g2 = 1.0 - h2 * h2                                                             # dout/dz2 (/w3)
        g1 = (1.0 - h1 * h1) * jnp.dot(w2b, g2, preferred_element_type=jnp.float32)    # MXU
        return jnp.sum(g1, axis=0, keepdims=True)                                      # (1, Nb)

    def leapfrog(qc, pc):
        qc = qc + grad_inc(pc, w1b_kin, b1b_kin, w2f_kin, b2b_kin, w2b_kin)  # q += dt·dT/dp(p)
        pc = pc + grad_inc(qc, w1b_pot, b1b_pot, w2f_pot, b2b_pot, w2b_pot)  # p -= dt·dU/dq(q_new)
        return qc, pc

    if n_stack <= UNROLL_LIMIT:
        for _ in range(n_stack):
            q, p = leapfrog(q, p)
    else:
        q, p = jax.lax.fori_loop(0, n_stack, lambda _, c: leapfrog(*c), (q, p), unroll=4)

    qp_out_ref[0:1, :] = q
    qp_out_ref[1:2, :] = p


# --------------------------------------------------------------------------------------
# host-side packing / wrapper
# --------------------------------------------------------------------------------------
def pack_params(pot_params, kin_params, dt):
    """PyTorch-layout ((W1,b1),(W2,b2),(W3,b3)) per MLP -> 2 packed kernel operands.

    Backward matrices carry the full constant factor of the analytic gradient:
        grad·(±dt) = sum_i (1-h1_i²) · [ (±dt)·w1_i · W2ᵀ · diag(w3) · (1-h2²) ]_i
    """
    (W1p, b1p), (W2p, b2p), (W3p, _b3p) = pot_params
    (W1k, b1k), (W2k, b2k), (W3k, _b3k) = kin_params
    dt = jnp.asarray(dt, jnp.float32)

    w2b_pot = (-dt) * W1p[:, 0][:, None] * W2p.T * W3p[0, :][None, :]   # (H, H)
    w2b_kin = (dt) * W1k[:, 0][:, None] * W2k.T * W3k[0, :][None, :]    # (H, H)

    mats = jnp.stack([W2p, w2b_pot, W2k, w2b_kin], axis=0).astype(jnp.float32)   # (4, H, H)
    cols = jnp.stack([W1p[:, 0], b1p, b2p,
                      W1k[:, 0], b1k, b2k], axis=1).astype(jnp.float32)          # (H, 6)
    return mats, cols


def _tensorcores_per_chip():
    """Best-effort TC-per-chip detection (v4/v5p/v7x have 2; v5e/v6e have 1)."""
    try:
        kind = jax.devices()[0].device_kind.lower()
    except Exception:
        return 1
    if "v7" in kind or "v4" in kind or "v5p" in kind:
        return 2
    return 1


def _choose_tile(n):
    """Lane-axis tile + padded batch: one big tile on 1-TC chips, >=2 tiles on multi-TC chips."""
    n128 = max(LANES, -(-n // LANES) * LANES)
    cores = _tensorcores_per_chip()
    if cores > 1 and n128 >= cores * LANES:
        tile = max(LANES, min(MAX_TILE, (n128 // cores) // LANES * LANES))
    else:
        tile = min(MAX_TILE, n128)
    n_pad = -(-n128 // tile) * tile
    return tile, n_pad


@partial(jax.jit, static_argnums=(5,))
def mlp2h_separable_hamil_lf(q, p, time_step, pot_params, kin_params, n_stack):
    """q, p: (N, 1) -> (q_next, p_next): (N, 1) after n_stack leapfrog steps."""
    N = q.shape[0]
    H = pot_params[0][0].shape[0]

    tile, n_pad = _choose_tile(N)

    # batch on lanes, padded to a multiple of the tile
    qp = jnp.zeros((2, n_pad), jnp.float32)
    qp = qp.at[0, :N].set(q[:, 0].astype(jnp.float32))
    qp = qp.at[1, :N].set(p[:, 0].astype(jnp.float32))

    mats, cols = pack_params(pot_params, kin_params, time_step)

    grid = (n_pad // tile,)
    qp_out = pl.pallas_call(
        partial(hnn_lf_kernel, n_stack=int(n_stack)),
        out_shape=jax.ShapeDtypeStruct((2, n_pad), jnp.float32),
        grid_spec=pltpu.PrefetchScalarGridSpec(
            num_scalar_prefetch=0,
            grid=grid,
            in_specs=[pl.BlockSpec((2, tile), lambda i: (0, i)),       # qp (tiled over lanes)
                      pl.BlockSpec((4, H, H), lambda i: (0, 0, 0)),    # weights broadcast
                      pl.BlockSpec((H, 6), lambda i: (0, 0))],
            out_specs=pl.BlockSpec((2, tile), lambda i: (0, i)),
        ),
        compiler_params=pltpu.CompilerParams(dimension_semantics=("parallel",)),
        input_output_aliases={0: 0},
    )(qp, mats, cols)

    q_out = qp_out[0, :N].reshape(N, 1)
    p_out = qp_out[1, :N].reshape(N, 1)
    return q_out, p_out


# --------------------------------------------------------------------------------------
# deterministic init (stand-in for torch.nn.Linear default init) + pure-JAX reference
# --------------------------------------------------------------------------------------
def init_linear(key, fan_in, fan_out):
    kw, kb = jax.random.split(key)
    bound = 1.0 / math.sqrt(fan_in)
    w = jax.random.uniform(kw, (fan_out, fan_in), jnp.float32, -bound, bound)
    b = jax.random.uniform(kb, (fan_out,), jnp.float32, -bound, bound)
    return w, b


def init_mlp(key, n_input, n_hidden):
    k1, k2, k3 = jax.random.split(key, 3)
    return (init_linear(k1, n_input, n_hidden),
            init_linear(k2, n_hidden, n_hidden),
            init_linear(k3, n_hidden, 1))


def _mlp_scalar(x, params):
    (W1, b1), (W2, b2), (W3, b3) = params
    h1 = jnp.tanh(x @ W1.T + b1)
    h2 = jnp.tanh(h1 @ W2.T + b2)
    return h2 @ W3.T + b3


def ref_forward(q, p, dt, pot_params, kin_params, n_stack):
    """Autograd reference mirroring derivative_ML + the PyTorch forward."""
    grad_U = jax.grad(lambda x: jnp.sum(_mlp_scalar(x, pot_params)))
    grad_T = jax.grad(lambda x: jnp.sum(_mlp_scalar(x, kin_params)))
    for _ in range(n_stack):
        q = q + grad_T(p) * dt
        p = p - grad_U(q) * dt
    return q, p


if __name__ == "__main__":
    key = jax.random.PRNGKey(0)
    kq, kp, kpot, kkin = jax.random.split(key, 4)

    pot_params = init_mlp(kpot, N_INPUT, N_HIDDEN)
    kin_params = init_mlp(kkin, N_INPUT, N_HIDDEN)

    # check 1: lane-width batch, fully unrolled leapfrog, single-tile grid
    q0 = jax.random.normal(kq, (BATCH, N_INPUT), jnp.float32)
    p0 = jax.random.normal(kp, (BATCH, N_INPUT), jnp.float32)
    q1, p1 = mlp2h_separable_hamil_lf(q0, p0, TIME_STEP, pot_params, kin_params, N_STACK)
    jax.block_until_ready((q1, p1))
    q_r, p_r = ref_forward(q0, p0, TIME_STEP, pot_params, kin_params, N_STACK)
    assert jnp.allclose(q1, q_r, atol=1e-5), "q mismatch vs autograd reference"
    assert jnp.allclose(p1, p_r, atol=1e-5), "p mismatch vs autograd reference"

    # check 2: larger batch + n_stack -> multi-tile "parallel" grid + fori_loop(unroll=4) path
    kq2, kp2 = jax.random.split(kq)
    big_batch, big_stack = 2048, 20
    q0b = jax.random.normal(kq2, (big_batch, N_INPUT), jnp.float32)
    p0b = jax.random.normal(kp2, (big_batch, N_INPUT), jnp.float32)
    q2, p2 = mlp2h_separable_hamil_lf(q0b, p0b, TIME_STEP, pot_params, kin_params, big_stack)
    jax.block_until_ready((q2, p2))
    q_rb, p_rb = ref_forward(q0b, p0b, TIME_STEP, pot_params, kin_params, big_stack)
    assert jnp.allclose(q2, q_rb, atol=1e-4), "q mismatch (large batch) vs autograd reference"
    assert jnp.allclose(p2, p_rb, atol=1e-4), "p mismatch (large batch) vs autograd reference"

    print("KERNEL_OK")
</pallas_src>

<mosaic_0001>
module attributes {stable_mosaic.version = 11 : i64} {
  func.func @hnn_lf_kernel(%arg0: i32, %arg1: memref<2x128xf32, #tpu.memory_space<vmem>>, %arg2: memref<4x32x32xf32, #tpu.memory_space<vmem>>, %arg3: memref<32x6xf32, #tpu.memory_space<vmem>>, %arg4: memref<2x128xf32, #tpu.memory_space<vmem>>) attributes {dimension_semantics = [#tpu.dimension_semantics<parallel>], iteration_bounds = array<i64: 1>, scalar_prefetch = 0 : i64, scratch_operands = 0 : i64, tpu.core_type = #tpu.core_type<tc>, window_params = [{transform_indices = @transform_0, window_bounds = array<i64: 2, 128>}, {pipeline_mode = #tpu.pipeline_mode<synchronous>, transform_indices = @transform_1, window_bounds = array<i64: 4, 32, 32>}, {pipeline_mode = #tpu.pipeline_mode<synchronous>, transform_indices = @transform_2, window_bounds = array<i64: 32, 6>}, {transform_indices = @transform_3, window_bounds = array<i64: 2, 128>}]} {
    %c0 = arith.constant 0 : index
    %c0_0 = arith.constant 0 : index
    %0 = vector.load %arg1[%c0, %c0_0] : memref<2x128xf32, #tpu.memory_space<vmem>>, vector<1x128xf32>
    %c1 = arith.constant 1 : index
    %c0_1 = arith.constant 0 : index
    %1 = vector.load %arg1[%c1, %c0_1] : memref<2x128xf32, #tpu.memory_space<vmem>>, vector<1x128xf32>
    %c0_2 = arith.constant 0 : index
    %c0_3 = arith.constant 0 : index
    %c0_4 = arith.constant 0 : index
    %2 = vector.load %arg2[%c0_2, %c0_3, %c0_4] : memref<4x32x32xf32, #tpu.memory_space<vmem>>, vector<1x32x32xf32>
    %3 = vector.shape_cast %2 : vector<1x32x32xf32> to vector<32x32xf32>
    %c1_5 = arith.constant 1 : index
    %c0_6 = arith.constant 0 : index
    %c0_7 = arith.constant 0 : index
    %4 = vector.load %arg2[%c1_5, %c0_6, %c0_7] : memref<4x32x32xf32, #tpu.memory_space<vmem>>, vector<1x32x32xf32>
    %5 = vector.shape_cast %4 : vector<1x32x32xf32> to vector<32x32xf32>
    %c2 = arith.constant 2 : index
    %c0_8 = arith.constant 0 : index
    %c0_9 = arith.constant 0 : index
    %6 = vector.load %arg2[%c2, %c0_8, %c0_9] : memref<4x32x32xf32, #tpu.memory_space<vmem>>, vector<1x32x32xf32>
    %7 = vector.shape_cast %6 : vector<1x32x32xf32> to vector<32x32xf32>
    %c3 = arith.constant 3 : index
    %c0_10 = arith.constant 0 : index
    %c0_11 = arith.constant 0 : index
    %8 = vector.load %arg2[%c3, %c0_10, %c0_11] : memref<4x32x32xf32, #tpu.memory_space<vmem>>, vector<1x32x32xf32>
    %9 = vector.shape_cast %8 : vector<1x32x32xf32> to vector<32x32xf32>
    %c0_12 = arith.constant 0 : index
    %c0_13 = arith.constant 0 : index
    %10 = vector.load %arg3[%c0_12, %c0_13] : memref<32x6xf32, #tpu.memory_space<vmem>>, vector<32x1xf32>
    %11 = vector.shape_cast %10 : vector<32x1xf32> to vector<32x1xf32>
    %12 = vector.broadcast %11 : vector<32x1xf32> to vector<32x128xf32>
    %c0_14 = arith.constant 0 : index
    %c1_15 = arith.constant 1 : index
    %13 = vector.load %arg3[%c0_14, %c1_15] : memref<32x6xf32, #tpu.memory_space<vmem>>, vector<32x1xf32>
    %14 = vector.shape_cast %13 : vector<32x1xf32> to vector<32x1xf32>
    %15 = vector.broadcast %14 : vector<32x1xf32> to vector<32x128xf32>
    %c0_16 = arith.constant 0 : index
    %c2_17 = arith.constant 2 : index
    %16 = vector.load %arg3[%c0_16, %c2_17] : memref<32x6xf32, #tpu.memory_space<vmem>>, vector<32x1xf32>
    %17 = vector.shape_cast %16 : vector<32x1xf32> to vector<32x1xf32>
    %18 = vector.broadcast %17 : vector<32x1xf32> to vector<32x128xf32>
    %c0_18 = arith.constant 0 : index
    %c3_19 = arith.constant 3 : index
    %19 = vector.load %arg3[%c0_18, %c3_19] : memref<32x6xf32, #tpu.memory_space<vmem>>, vector<32x1xf32>
    %20 = vector.shape_cast %19 : vector<32x1xf32> to vector<32x1xf32>
    %21 = vector.broadcast %20 : vector<32x1xf32> to vector<32x128xf32>
    %c0_20 = arith.constant 0 : index
    %c4 = arith.constant 4 : index
    %22 = vector.load %arg3[%c0_20, %c4] : memref<32x6xf32, #tpu.memory_space<vmem>>, vector<32x1xf32>
    %23 = vector.shape_cast %22 : vector<32x1xf32> to vector<32x1xf32>
    %24 = vector.broadcast %23 : vector<32x1xf32> to vector<32x128xf32>
    %c0_21 = arith.constant 0 : index
    %c5 = arith.constant 5 : index
    %25 = vector.load %arg3[%c0_21, %c5] : memref<32x6xf32, #tpu.memory_space<vmem>>, vector<32x1xf32>
    %26 = vector.shape_cast %25 : vector<32x1xf32> to vector<32x1xf32>
    %27 = vector.broadcast %26 : vector<32x1xf32> to vector<32x128xf32>
    %28 = vector.broadcast %1 : vector<1x128xf32> to vector<32x128xf32>
    %29 = arith.mulf %21, %28 : vector<32x128xf32>
    %30 = arith.addf %29, %24 : vector<32x128xf32>
    %31 = math.tanh %30 : vector<32x128xf32>
    %cst = arith.constant dense<0.000000e+00> : vector<32x128xf32>
    %32 = tpu.matmul %7, %31, %cst {dimension_numbers = #tpu.dot_dimension_numbers<[1], [0], [0], [1], [0, 0, 1, 1], [], []>} : vector<32x32xf32>, vector<32x128xf32>, vector<32x128xf32> -> vector<32x128xf32>
    %33 = arith.addf %32, %27 : vector<32x128xf32>
    %34 = math.tanh %33 : vector<32x128xf32>
    %35 = arith.mulf %34, %34 : vector<32x128xf32>
    %cst_22 = arith.constant 1.000000e+00 : f32
    %36 = vector.broadcast %cst_22 : f32 to vector<32x128xf32>
    %37 = arith.subf %36, %35 : vector<32x128xf32>
    %38 = arith.mulf %31, %31 : vector<32x128xf32>
    %cst_23 = arith.constant 1.000000e+00 : f32
    %39 = vector.broadcast %cst_23 : f32 to vector<32x128xf32>
    %40 = arith.subf %39, %38 : vector<32x128xf32>
    %cst_24 = arith.constant dense<0.000000e+00> : vector<32x128xf32>
    %41 = tpu.matmul %9, %37, %cst_24 {dimension_numbers = #tpu.dot_dimension_numbers<[1], [0], [0], [1], [0, 0, 1, 1], [], []>} : vector<32x32xf32>, vector<32x128xf32>, vector<32x128xf32> -> vector<32x128xf32>
    %42 = arith.mulf %40, %41 : vector<32x128xf32>
    %cst_25 = arith.constant dense<0.000000e+00> : vector<128xf32>
    %43 = vector.multi_reduction <add>, %42, %cst_25 [0] : vector<32x128xf32> to vector<128xf32>
    %44 = vector.shape_cast %43 : vector<128xf32> to vector<1x128xf32>
    %45 = arith.addf %0, %44 : vector<1x128xf32>
    %46 = vector.broadcast %45 : vector<1x128xf32> to vector<32x128xf32>
    %47 = arith.mulf %12, %46 : vector<32x128xf32>
    %48 = arith.addf %47, %15 : vector<32x128xf32>
    %49 = math.tanh %48 : vector<32x128xf32>
    %cst_26 = arith.constant dense<0.000000e+00> : vector<32x128xf32>
    %50 = tpu.matmul %3, %49, %cst_26 {dimension_numbers = #tpu.dot_dimension_numbers<[1], [0], [0], [1], [0, 0, 1, 1], [], []>} : vector<32x32xf32>, vector<32x128xf32>, vector<32x128xf32> -> vector<32x128xf32>
    %51 = arith.addf %50, %18 : vector<32x128xf32>
    %52 = math.tanh %51 : vector<32x128xf32>
    %53 = arith.mulf %52, %52 : vector<32x128xf32>
    %cst_27 = arith.constant 1.000000e+00 : f32
    %54 = vector.broadcast %cst_27 : f32 to vector<32x128xf32>
    %55 = arith.subf %54, %53 : vector<32x128xf32>
    %56 = arith.mulf %49, %49 : vector<32x128xf32>
    %cst_28 = arith.constant 1.000000e+00 : f32
    %57 = vector.broadcast %cst_28 : f32 to vector<32x128xf32>
    %58 = arith.subf %57, %56 : vector<32x128xf32>
    %cst_29 = arith.constant dense<0.000000e+00> : vector<32x128xf32>
    %59 = tpu.matmul %5, %55, %cst_29 {dimension_numbers = #tpu.dot_dimension_numbers<[1], [0], [0], [1], [0, 0, 1, 1], [], []>} : vector<32x32xf32>, vector<32x128xf32>, vector<32x128xf32> -> vector<32x128xf32>
    %60 = arith.mulf %58, %59 : vector<32x128xf32>
    %cst_30 = arith.constant dense<0.000000e+00> : vector<128xf32>
    %61 = vector.multi_reduction <add>, %60, %cst_30 [0] : vector<32x128xf32> to vector<128xf32>
    %62 = vector.shape_cast %61 : vector<128xf32> to vector<1x128xf32>
    %63 = arith.addf %1, %62 : vector<1x128xf32>
    %64 = vector.broadcast %63 : vector<1x128xf32> to vector<32x128xf32>
    %65 = arith.mulf %21, %64 : vector<32x128xf32>
    %66 = arith.addf %65, %24 : vector<32x128xf32>
    %67 = math.tanh %66 : vector<32x128xf32>
    %cst_31 = arith.constant dense<0.000000e+00> : vector<32x128xf32>
    %68 = tpu.matmul %7, %67, %cst_31 {dimension_numbers = #tpu.dot_dimension_numbers<[1], [0], [0], [1], [0, 0, 1, 1], [], []>} : vector<32x32xf32>, vector<32x128xf32>, vector<32x128xf32> -> vector<32x128xf32>
    %69 = arith.addf %68, %27 : vector<32x128xf32>
    %70 = math.tanh %69 : vector<32x128xf32>
    %71 = arith.mulf %70, %70 : vector<32x128xf32>
    %cst_32 = arith.constant 1.000000e+00 : f32
    %72 = vector.broadcast %cst_32 : f32 to vector<32x128xf32>
    %73 = arith.subf %72, %71 : vector<32x128xf32>
    %74 = arith.mulf %67, %67 : vector<32x128xf32>
    %cst_33 = arith.constant 1.000000e+00 : f32
    %75 = vector.broadcast %cst_33 : f32 to vector<32x128xf32>
    %76 = arith.subf %75, %74 : vector<32x128xf32>
    %cst_34 = arith.constant dense<0.000000e+00> : vector<32x128xf32>
    %77 = tpu.matmul %9, %73, %cst_34 {dimension_numbers = #tpu.dot_dimension_numbers<[1], [0], [0], [1], [0, 0, 1, 1], [], []>} : vector<32x32xf32>, vector<32x128xf32>, vector<32x128xf32> -> vector<32x128xf32>
    %78 = arith.mulf %76, %77 : vector<32x128xf32>
    %cst_35 = arith.constant dense<0.000000e+00> : vector<128xf32>
    %79 = vector.multi_reduction <add>, %78, %cst_35 [0] : vector<32x128xf32> to vector<128xf32>
    %80 = vector.shape_cast %79 : vector<128xf32> to vector<1x128xf32>
    %81 = arith.addf %45, %80 : vector<1x128xf32>
    %82 = vector.broadcast %81 : vector<1x128xf32> to vector<32x128xf32>
    %83 = arith.mulf %12, %82 : vector<32x128xf32>
    %84 = arith.addf %83, %15 : vector<32x128xf32>
    %85 = math.tanh %84 : vector<32x128xf32>
    %cst_36 = arith.constant dense<0.000000e+00> : vector<32x128xf32>
    %86 = tpu.matmul %3, %85, %cst_36 {dimension_numbers = #tpu.dot_dimension_numbers<[1], [0], [0], [1], [0, 0, 1, 1], [], []>} : vector<32x32xf32>, vector<32x128xf32>, vector<32x128xf32> -> vector<32x128xf32>
    %87 = arith.addf %86, %18 : vector<32x128xf32>
    %88 = math.tanh %87 : vector<32x128xf32>
    %89 = arith.mulf %88, %88 : vector<32x128xf32>
    %cst_37 = arith.constant 1.000000e+00 : f32
    %90 = vector.broadcast %cst_37 : f32 to vector<32x128xf32>
    %91 = arith.subf %90, %89 : vector<32x128xf32>
    %92 = arith.mulf %85, %85 : vector<32x128xf32>
    %cst_38 = arith.constant 1.000000e+00 : f32
    %93 = vector.broadcast %cst_38 : f32 to vector<32x128xf32>
    %94 = arith.subf %93, %92 : vector<32x128xf32>
    %cst_39 = arith.constant dense<0.000000e+00> : vector<32x128xf32>
    %95 = tpu.matmul %5, %91, %cst_39 {dimension_numbers = #tpu.dot_dimension_numbers<[1], [0], [0], [1], [0, 0, 1, 1], [], []>} : vector<32x32xf32>, vector<32x128xf32>, vector<32x128xf32> -> vector<32x128xf32>
    %96 = arith.mulf %94, %95 : vector<32x128xf32>
    %cst_40 = arith.constant dense<0.000000e+00> : vector<128xf32>
    %97 = vector.multi_reduction <add>, %96, %cst_40 [0] : vector<32x128xf32> to vector<128xf32>
    %98 = vector.shape_cast %97 : vector<128xf32> to vector<1x128xf32>
    %99 = arith.addf %63, %98 : vector<1x128xf32>
    %c0_41 = arith.constant 0 : index
    %c0_42 = arith.constant 0 : index
    %100 = vector.load %arg4[%c0_41, %c0_42] : memref<2x128xf32, #tpu.memory_space<vmem>>, vector<1x128xf32>
    tpu.vector_store %arg4[%c0_41, %c0_42], %81 {strides = array<i32>} : memref<2x128xf32, #tpu.memory_space<vmem>>, vector<1x128xf32>,
    %c1_43 = arith.constant 1 : index
    %c0_44 = arith.constant 0 : index
    %101 = vector.load %arg4[%c1_43, %c0_44] : memref<2x128xf32, #tpu.memory_space<vmem>>, vector<1x128xf32>
    tpu.vector_store %arg4[%c1_43, %c0_44], %99 {strides = array<i32>} : memref<2x128xf32, #tpu.memory_space<vmem>>, vector<1x128xf32>,
    return
  }
  func.func @transform_0(%arg0: i32) -> (i32, i32) {
    %c0_i32 = arith.constant 0 : i32
    %c0_i32_0 = arith.constant 0 : i32
    return %c0_i32, %arg0 : i32, i32
  }
  func.func @transform_1(%arg0: i32) -> (i32, i32, i32) {
    %c0_i32 = arith.constant 0 : i32
    %c0_i32_0 = arith.constant 0 : i32
    %c0_i32_1 = arith.constant 0 : i32
    %c0_i32_2 = arith.constant 0 : i32
    return %c0_i32, %c0_i32_0, %c0_i32_1 : i32, i32, i32
  }
  func.func @transform_2(%arg0: i32) -> (i32, i32) {
    %c0_i32 = arith.constant 0 : i32
    %c0_i32_0 = arith.constant 0 : i32
    %c0_i32_1 = arith.constant 0 : i32
    return %c0_i32, %c0_i32_0 : i32, i32
  }
  func.func @transform_3(%arg0: i32) -> (i32, i32) {
    %c0_i32 = arith.constant 0 : i32
    %c0_i32_0 = arith.constant 0 : i32
    return %c0_i32, %arg0 : i32, i32
  }
}

</mosaic_0001>

<bundles_post_ra>
// kernel: mlp2h_separable_hamil_lf.1
= control target key start
LH: loop header
LB: loop body
LE: loop exit
PB: predicated region body
PF: predicated region fallthrough
CT: control target
= control target key end

     0   :  { %v1444_v0 = vmov 4   ;;  %v1445_v1 = vmov 3   ;;  %vm155_vm0 = vcmask 261120   ;;  %v1446_v7 = vmov 5   ;;  %s1807_s2 = inlined_call_operand.vmem [shape: f32[32,6], index: 2, kind: input, shape index: {}]   ;;  %s1808_s1 = inlined_call_operand.vmem [shape: f32[4,32,32], index: 1, kind: input, shape index: {}]   ;;  %s1809_s0 = inlined_call_operand.vmem [shape: f32[2,128], index: 0, kind: input, shape index: {}, may-alias: {0,3}]   ;;  %s1810_s3 = inlined_call_operand.vmem [shape: f32[2,128], index: 3, kind: output, shape index: {}, may-alias: {0,3}]  }
   0x1   :  { %1365 = vset.pattern.permute.xlu1 %v1444_v0  ;;  %1364 = vset.pattern.permute.xlu0 %v1445_v1  ;;  %v1473_v2 = vld [vmem:[%s1807_s2] sm:$0xff]  ;;  %v1480_v3 = vld [vmem:[%s1807_s2 + $0x8] sm:$0xff]  ;;  %v1487_v4 = vld [vmem:[%s1807_s2 + $0x10] sm:$0xff]  ;;  %v139_v8 = vlaneseq  ;;  %v1447_v39 = vmov 0   ;;  %v1448_v40 = vmov 1  }
   0x2   :  { %108 = vperm.xlu1 %1365, %v1473_v2   ;;  %92 = vperm.xlu0 %1364, %v1473_v2   ;;  %v1492_v5 = vld [vmem:[%s1807_s2 + $0x18] sm:$0xff]  ;;  %v1501_v6 = vld [vmem:[%s1808_s1 + $0x40] sm:$0xff]  ;;  %v1559_v35 = vld [vmem:[%s1808_s1 + $0x48] sm:$0xff] }
   0x3   :  { %1190 = vmatprep.mubr.msk.f32.mxu0 %vm155_vm0, %v1501_v6  ;;  %v140_v9 = vshrl.u32 %v139_v8, 7  ;;  %v1516_v11 = vld [vmem:[%s1809_s0 + $0x1] sm:$0x1]  ;;  %v1564_v36 = vld [vmem:[%s1808_s1 + $0x50] sm:$0xff]  ;;  %v1573_v37 = vld [vmem:[%s1808_s1 + $0x58] sm:$0xff] }
   0x4   :  { %v1580_v38 = vld [vmem:[%s1808_s1 + $0x60] sm:$0xff] }
   0x5   :  { %v1511_v10 = vsub.s32 0, %v140_v9  ;;  %1204 = vmatprep.mubr.msk.f32.mxu1 %vm155_vm0, %v1580_v38  ;;  %v1607_v9 = vld [vmem:[%s1808_s1 + $0x68] sm:$0xff] }
   0x6   :  { %112 = vperm.xlu1 %1365, %v1480_v3   ;;  %96 = vperm.xlu0 %1364, %v1480_v3  }
   0x7   :  { %v142_v12 = vrot.slane %v1516_v11, %v1511_v10 }
   0xa   :  { %1366 = vset.pattern.permute.xlu1 %v1445_v1  ;;  %100 = vperm.xlu0 %1364, %v1487_v4  }
   0xb   :  { %104 = vperm.xlu1 %1366, %v1492_v5  }
   0xe   :  { %1367 = vset.pattern.permute.xlu0 %v1444_v0 }
   0xf   :  { %1368 = vset.pattern.permute.xlu1 %v1444_v0  ;;  %116 = vperm.xlu0 %1367, %v1487_v4  }
  0x10   :  { %120 = vperm.xlu1 %1368, %v1492_v5  }
  0x13   :  { %1370 = vset.pattern.permute.xlu0 %v1446_v7 }
  0x14   :  { %1369 = vset.pattern.permute.xlu1 %v1446_v7  ;;  %128 = vperm.xlu0 %1370, %v1480_v3  }
  0x15   :  { %124 = vperm.xlu1 %1369, %v1473_v2  }
  0x18   :  { %1371 = vset.pattern.permute.xlu0 %v1447_v39 }
  0x19   :  { %132 = vperm.xlu1 %1369, %v1487_v4   ;;  %41 = vperm.xlu0 %1371, %v1473_v2  }
  0x1d   :  { %136 = vperm.xlu1 %1369, %v1492_v5   ;;  %1374 = vset.pattern.permute.xlu0 %v1448_v40 }
  0x1e   :  { %64 = vperm.xlu0 %1374, %v1480_v3  }
  0x21   :  { %1372 = vset.pattern.permute.xlu1 %v1447_v39 }
  0x22   :  { %46 = vperm.xlu1 %1372, %v1480_v3   ;;  %68 = vperm.xlu0 %1374, %v1487_v4  }
  0x26   :  { %1373 = vset.pattern.permute.xlu1 %v1448_v40 }
  0x27   :  { %60 = vperm.xlu1 %1373, %v1473_v2  }
  0x2b   :  { %1375 = vset.pattern.permute.xlu1 %v1447_v39 }
  0x2c   :  { %51 = vperm.xlu1 %1375, %v1487_v4  }
  0x30   :  { %56 = vperm.xlu1 %1375, %v1492_v5  }
  0x34   :  { %1376 = vset.pattern.permute.xlu1 %v1448_v40 }
  0x35   :  { %72 = vperm.xlu1 %1376, %v1492_v5  }
  0x81   :  { %v1520_v13 = vpop.permute.xlu1 %108  ;;  %v1522_v14 = vpop.permute.xlu0 %92 }
  0x82   :  { %v143_v15 = vmul.f32 %v142_v12, %v1522_v14 }
  0x84   :  { %v147_v16 = vadd.f32 %v143_v15, %v1520_v13  ;;  %v1621_v15 = vld [vmem:[%s1808_s1 + $0x78] sm:$0xff] }
  0x85   :  { %v1526_v17 = vpop.permute.xlu1 %112  ;;  %v1528_v18 = vpop.permute.xlu0 %96 }
  0x86   :  { %v144_v19 = vmul.f32 %v142_v12, %v1528_v18  ;;  %1380 = vtanh.f32 %v147_v16  ;;  %v1628_v16 = vld [vmem:[%s1808_s1] sm:$0xff] }
  0x88   :  { %v148_v20 = vadd.f32 %v144_v19, %v1526_v17  ;;  %v1449_v19 = vmov 2  }
  0x89   :  { %v1532_v21 = vpop.permute.xlu0 %100  ;;  %1378 = vset.pattern.permute.xlu1 %v1449_v19  ;;  %1377 = vset.pattern.permute.xlu0 %v1449_v19 }
  0x8a   :  { %1382 = vtanh.f32 %v148_v20  ;;  %v1534_v22 = vpop.permute.xlu1 %104  ;;  %v145_v23 = vmul.f32 %v142_v12, %v1532_v21  ;;  %80 = vperm.xlu1 %1378, %v1480_v3   ;;  %76 = vperm.xlu0 %1377, %v1473_v2  }
  0x8b   :  { %v146_v24 = vmul.f32 %v142_v12, %v1534_v22  ;;  %v1612_v12 = vld [vmem:[%s1808_s1 + $0x70] sm:$0xff] }
  0x8e   :  { %v1538_v25 = vpop.permute.xlu0 %116  ;;  %84 = vperm.xlu1 %1378, %v1487_v4   ;;  %88 = vperm.xlu0 %1377, %v1492_v5  }
  0x8f   :  { %v149_v26 = vadd.f32 %v145_v23, %v1538_v25  ;;  %v1541_v27 = vpop.permute.xlu1 %120 }
  0x90   :  { %v150_v28 = vadd.f32 %v146_v24, %v1541_v27  ;;  %v1544_v29 = vpop.eup %1380 }
  0x91   :  { %1384 = vtanh.f32 %v149_v26  ;;  %v265_v23 = vmul.f32 %v1544_v29, %v1544_v29 }
  0x92   :  { %1386 = vtanh.f32 %v150_v28  ;;  %1379 = vset.pattern.permute.xlu0 %v1446_v7 }
  0x93   :  { %v1596_v43 = vpop.permute.xlu0 %128  ;;  %v269_v3 = vsub.f32 1.0, %v265_v23 }
  0x94   :  { %v1546_v30 = vpop.eup %1382  ;;  %v1592_v41 = vpop.permute.xlu1 %124 }
  0x95   :  { %v1294_v31 = vpack.c.bf16 %v1546_v30, %v1544_v29  ;;  %v266_v20 = vmul.f32 %v1546_v30, %v1546_v30 }
  0x97   :  { %1295 = vmatprep.subr.bf16.mxu0 %v1294_v31  ;;  %v270_v24 = vsub.f32 1.0, %v266_v20 }
  0x98   :  { %1297 = vmatpush3.bf16.msra.mxu0 %v1294_v31  ;;  %v1594_v42 = vpop.permute.xlu1 %132 }
  0x9b   :  { %v1550_v32 = vpop.eup %1384 }
  0x9c   :  { %v1552_v33 = vpop.eup %1386  ;;  %v1600_v48 = vpop.permute.xlu1 %136  ;;  %v267_v2 = vmul.f32 %v1550_v32, %v1550_v32 }
  0x9d   :  { %v1298_v34 = vpack.c.bf16 %v1552_v33, %v1550_v32  ;;  %v268_v26 = vmul.f32 %v1552_v33, %v1552_v33 }
  0x9e   :  { %v271_v40 = vsub.f32 1.0, %v267_v2 }
  0x9f   :  { %1299 = vmatprep.subr.bf16.mxu0 %v1298_v34 }
  0xa0   :  { %1301 = vmatpush3.bf16.msra.mxu0 %v1298_v34  ;;  %v272_v34 = vsub.f32 1.0, %v268_v26 }
  0xa1   :  { %v1645_v7 = vpop.permute.xlu1 %46 }
  0xa3   :  { %1191 = vmatmul.mubr.msk.f32.vlgmr.msra.gmra.mrb[0].mxu0 %vm155_vm0, %v1559_v35 }
  0xa4   :  { %1193 = vmatprep.mubr.msk.f32.mxu0 %vm155_vm0, %v1564_v36 }
  0xa7   :  { %1194 = vmatmul.mubr.msk.f32.gmra.mrb[2].mxu0 %vm155_vm0, %v1573_v37 }
  0xa8   :  { %1218 = vmatprep.mubr.msk.f32.mxu0 %vm155_vm0, %v1628_v16 }
 0x176   :  { %v1192_v44 = vpop.f32.mrb[0].mxu0 }
 0x177   :  { %v240_v45 = vadd.f32 %v1192_v44, %v1596_v43  ;;  %v234_v46 = vpop.f32.mrb[1].mxu0 }
 0x178   :  { %v235_v47 = vadd.f32 %v234_v46, %v1592_v41 }
 0x179   :  { %1388 = vtanh.f32 %v240_v45 }
 0x17a   :  { %1390 = vtanh.f32 %v235_v47  ;;  %v1195_v49 = vpop.f32.mrb[2].mxu0  ;;  %v1647_v47 = vpop.permute.xlu1 %60 }
 0x17b   :  { %v250_v50 = vadd.f32 %v1195_v49, %v1600_v48  ;;  %v244_v51 = vpop.f32.mrb[3].mxu0 }
 0x17c   :  { %v245_v52 = vadd.f32 %v244_v51, %v1594_v42 }
 0x17d   :  { %1392 = vtanh.f32 %v250_v50 }
 0x17e   :  { %1394 = vtanh.f32 %v245_v52  ;;  %v1649_v51 = vpop.permute.xlu1 %51  ;;  %v1651_v52 = vpop.permute.xlu0 %41 }
 0x183   :  { %v1389_v53 = vpop.eup %1388 }
 0x184   :  { %v1391_v54 = vpop.eup %1390  ;;  %v258_v55 = vmul.f32 %v1389_v53, %v1389_v53 }
 0x185   :  { %v257_v56 = vmul.f32 %v1391_v54, %v1391_v54 }
 0x186   :  { %v262_v57 = vsub.f32 1.0, %v258_v55  ;;  %v14_v55 = vld [vmem:[%s1809_s0] sm:$0x1] }
 0x187   :  { %v1393_v58 = vpop.eup %1392  ;;  %v261_v59 = vsub.f32 1.0, %v257_v56  ;;  %v1656_v56 = vpop.permute.xlu1 %56 }
 0x188   :  { %v1395_v60 = vpop.eup %1394  ;;  %v260_v61 = vmul.f32 %v1393_v58, %v1393_v58  ;;  %v1658_v58 = vpop.permute.xlu0 %64 }
 0x189   :  { %v259_v62 = vmul.f32 %v1395_v60, %v1395_v60  ;;  %v1302_v63 = vpack.c.bf16 %v262_v57, %v261_v59 }
 0x18a   :  { %v264_v0 = vsub.f32 1.0, %v260_v61 }
 0x18b   :  { %v263_v1 = vsub.f32 1.0, %v259_v62  ;;  %1303 = vmatprep.subr.bf16.mxu1 %v1302_v63  ;;  %v1664_v61 = vpop.permute.xlu1 %72 }
 0x18c   :  { %1305 = vmatpush3.bf16.msra.mxu1 %v1302_v63 }
 0x18d   :  { %v1306_v8 = vpack.c.bf16 %v264_v0, %v263_v1 }
 0x18f   :  { %1307 = vmatprep.subr.bf16.mxu1 %v1306_v8 }
 0x190   :  { %1309 = vmatpush3.bf16.msra.mxu1 %v1306_v8  ;;  %v1670_v8 = vpop.permute.xlu0 %68 }
 0x193   :  { %1205 = vmatmul.mubr.msk.f32.vlgmr.msra.gmra.mrb[0].mxu1 %vm155_vm0, %v1607_v9 }
 0x194   :  { %1207 = vmatprep.mubr.msk.f32.mxu1 %vm155_vm0, %v1612_v12 }
 0x197   :  { %1208 = vmatmul.mubr.msk.f32.gmra.mrb[2].mxu1 %vm155_vm0, %v1621_v15 }
 0x266   :  { %v1206_v28 = vpop.f32.mrb[0].mxu1 }
 0x267   :  { %v371_v4 = vmul.f32 %v1206_v28, %v270_v24  ;;  %v351_v31 = vpop.f32.mrb[1].mxu1 }
 0x268   :  { %v370_v5 = vmul.f32 %v351_v31, %v269_v3 }
 0x26a   :  { %v374_v39 = vadd.f32 %v371_v4, %v370_v5  ;;  %v1209_v30 = vpop.f32.mrb[2].mxu1  ;;  %v1679_v5 = vld [vmem:[%s1808_s1 + $0x8] sm:$0xff] }
 0x26b   :  { %v373_v44 = vmul.f32 %v1209_v30, %v272_v34  ;;  %v361_v29 = vpop.f32.mrb[3].mxu1  ;;  %v1684_v34 = vld [vmem:[%s1808_s1 + $0x10] sm:$0xff]  ;;  %v1702_v30 = vld [vmem:[%s1808_s1 + $0x20] sm:$0xff] }
 0x26c   :  { %v372_v45 = vmul.f32 %v361_v29, %v271_v40  ;;  %1232 = vmatprep.mubr.msk.f32.mxu1 %vm155_vm0, %v1702_v30  ;;  %v1706_v40 = vpop.permute.xlu0 %76 }
 0x26e   :  { %v375_v46 = vadd.f32 %v374_v39, %v372_v45  ;;  %v1693_v39 = vld [vmem:[%s1808_s1 + $0x18] sm:$0xff] }
 0x270   :  { %v376_v33 = vadd.f32 %v375_v46, %v373_v44  ;;  %v1708_v44 = vpop.permute.xlu1 %80 }
 0x272   :  { %v377_v49 = vrot.slane %v376_v33, 4 }
 0x274   :  { %v378_v50 = vadd.f32 %v377_v49, %v376_v33 }
 0x276   :  { %v379_v32 = vrot.slane %v378_v50, 2 }
 0x278   :  { %v380_v53 = vadd.f32 %v379_v32, %v378_v50  ;;  %v1714_v50 = vpop.permute.xlu1 %84 }
 0x27a   :  { %v381_v54 = vrot.slane %v380_v53, 1 }
 0x27c   :  { %v382_v57 = vadd.f32 %v381_v54, %v380_v53 }
 0x27e   :  { %v1660_v59 = vadd.f32 %v382_v57, %v14_v55 }
 0x280   :  { %v387_v60 = vrot.slane %v1660_v59, %v1511_v10 }
 0x282   :  { %v389_v62 = vmul.f32 %v387_v60, %v1645_v7  ;;  %v390_v63 = vmul.f32 %v387_v60, %v1649_v51  ;;  %v388_v0 = vmul.f32 %v387_v60, %v1651_v52  ;;  %v391_v1 = vmul.f32 %v387_v60, %v1656_v56 }
 0x284   :  { %v392_v19 = vadd.f32 %v388_v0, %v1647_v47  ;;  %v393_v20 = vadd.f32 %v389_v62, %v1658_v58  ;;  %v395_v23 = vadd.f32 %v391_v1, %v1664_v61  ;;  %v394_v24 = vadd.f32 %v390_v63, %v1670_v8 }
 0x286   :  { %1396 = vtanh.f32 %v392_v19 }
 0x287   :  { %1398 = vtanh.f32 %v393_v20 }
 0x288   :  { %1400 = vtanh.f32 %v395_v23 }
 0x289   :  { %1402 = vtanh.f32 %v394_v24 }
 0x290   :  { %v1397_v26 = vpop.eup %1396 }
 0x291   :  { %v1399_v28 = vpop.eup %1398 }
 0x292   :  { %v1401_v3 = vpop.eup %1400  ;;  %v1310_v2 = vpack.c.bf16 %v1399_v28, %v1397_v26 }
 0x293   :  { %v1403_v4 = vpop.eup %1402 }
 0x294   :  { %1311 = vmatprep.subr.bf16.mxu0 %v1310_v2  ;;  %v1314_v31 = vpack.c.bf16 %v1401_v3, %v1403_v4 }
 0x295   :  { %1313 = vmatpush3.bf16.msra.mxu0 %v1310_v2 }
 0x296   :  { %1315 = vmatprep.subr.bf16.mxu0 %v1314_v31 }
 0x299   :  { %1317 = vmatpush3.bf16.msra.mxu0 %v1314_v31 }
 0x29c   :  { %1219 = vmatmul.mubr.msk.f32.vlgmr.msra.gmra.mrb[4].mxu0 %vm155_vm0, %v1679_v5 }
 0x29d   :  { %1221 = vmatprep.mubr.msk.f32.mxu0 %vm155_vm0, %v1684_v34 }
 0x2a0   :  { %1222 = vmatmul.mubr.msk.f32.gmra.mrb[6].mxu0 %vm155_vm0, %v1693_v39 }
 0x2a1   :  { %1246 = vmatprep.mubr.msk.f32.mxu0 %vm155_vm0, %v1501_v6  ;;  %v1712_v6 = vpop.permute.xlu0 %88 }
 0x36f   :  { %v1220_v29 = vpop.f32.mrb[4].mxu0 }
 0x370   :  { %v484_v45 = vadd.f32 %v1220_v29, %v1708_v44  ;;  %v478_v46 = vpop.f32.mrb[5].mxu0 }
 0x371   :  { %v479_v33 = vadd.f32 %v478_v46, %v1706_v40  ;;  %v1726_v46 = vld [vmem:[%s1808_s1 + $0x30] sm:$0xff] }
 0x372   :  { %1404 = vtanh.f32 %v484_v45  ;;  %v1721_v45 = vld [vmem:[%s1808_s1 + $0x28] sm:$0xff]  ;;  %1813 = vst [vmem:[#allocation2_spill] sm:$0xff] %v1726_v46 }
 0x373   :  { %1406 = vtanh.f32 %v479_v33  ;;  %v1223_v49 = vpop.f32.mrb[6].mxu0  ;;  %v1735_v33 = vld [vmem:[%s1808_s1 + $0x38] sm:$0xff] }
 0x374   :  { %v494_v32 = vadd.f32 %v1223_v49, %v1712_v6  ;;  %v488_v53 = vpop.f32.mrb[7].mxu0  ;;  %1814 = vst [vmem:[#allocation3_spill] sm:$0xff] %v1735_v33  ;;  %v510_v49 = vmul.f32 %v1399_v28, %v1399_v28 }
 0x375   :  { %v489_v54 = vadd.f32 %v488_v53, %v1714_v50 }
 0x376   :  { %1408 = vtanh.f32 %v494_v32  ;;  %v509_v32 = vmul.f32 %v1397_v26, %v1397_v26  ;;  %v514_v53 = vsub.f32 1.0, %v510_v49 }
 0x377   :  { %1410 = vtanh.f32 %v489_v54  ;;  %v512_v54 = vmul.f32 %v1401_v3, %v1401_v3 }
 0x37c   :  { %v1405_v55 = vpop.eup %1404 }
 0x37d   :  { %v1407_v57 = vpop.eup %1406  ;;  %v502_v60 = vmul.f32 %v1405_v55, %v1405_v55 }
 0x37e   :  { %v501_v62 = vmul.f32 %v1407_v57, %v1407_v57  ;;  %v513_v57 = vsub.f32 1.0, %v509_v32 }
 0x37f   :  { %v506_v63 = vsub.f32 1.0, %v502_v60  ;;  %v511_v60 = vmul.f32 %v1403_v4, %v1403_v4 }
 0x380   :  { %v1409_v0 = vpop.eup %1408  ;;  %v505_v1 = vsub.f32 1.0, %v501_v62 }
 0x381   :  { %v1411_v19 = vpop.eup %1410  ;;  %v504_v20 = vmul.f32 %v1409_v0, %v1409_v0 }
 0x382   :  { %v503_v23 = vmul.f32 %v1411_v19, %v1411_v19  ;;  %v1318_v24 = vpack.c.bf16 %v506_v63, %v505_v1  ;;  %v516_v1 = vsub.f32 1.0, %v512_v54 }
 0x383   :  { %v508_v2 = vsub.f32 1.0, %v504_v20 }
 0x384   :  { %v507_v31 = vsub.f32 1.0, %v503_v23  ;;  %1319 = vmatprep.subr.bf16.mxu1 %v1318_v24  ;;  %v515_v23 = vsub.f32 1.0, %v511_v60 }
 0x385   :  { %1321 = vmatpush3.bf16.msra.mxu1 %v1318_v24 }
 0x386   :  { %v1322_v29 = vpack.c.bf16 %v508_v2, %v507_v31 }
 0x388   :  { %1323 = vmatprep.subr.bf16.mxu1 %v1322_v29 }
 0x389   :  { %1325 = vmatpush3.bf16.msra.mxu1 %v1322_v29 }
 0x38c   :  { %1233 = vmatmul.mubr.msk.f32.vlgmr.msra.gmra.mrb[4].mxu1 %vm155_vm0, %v1721_v45 }
 0x38d   :  { %1235 = vmatprep.mubr.msk.f32.mxu1 %vm155_vm0, %v1726_v46 }
 0x390   :  { %1236 = vmatmul.mubr.msk.f32.gmra.mrb[6].mxu1 %vm155_vm0, %v1735_v33 }
 0x391   :  { %1260 = vmatprep.mubr.msk.f32.mxu1 %vm155_vm0, %v1580_v38 }
 0x45f   :  { %v1234_v55 = vpop.f32.mrb[4].mxu1 }
 0x460   :  { %v615_v62 = vmul.f32 %v1234_v55, %v514_v53  ;;  %v595_v63 = vpop.f32.mrb[5].mxu1 }
 0x461   :  { %v614_v0 = vmul.f32 %v595_v63, %v513_v57 }
 0x463   :  { %v618_v19 = vadd.f32 %v615_v62, %v614_v0  ;;  %v1237_v20 = vpop.f32.mrb[6].mxu1 }
 0x464   :  { %v617_v24 = vmul.f32 %v1237_v20, %v516_v1  ;;  %v605_v2 = vpop.f32.mrb[7].mxu1 }
 0x465   :  { %v616_v31 = vmul.f32 %v605_v2, %v515_v23 }
 0x467   :  { %v619_v29 = vadd.f32 %v618_v19, %v616_v31 }
 0x469   :  { %v620_v33 = vadd.f32 %v619_v29, %v617_v24 }
 0x46b   :  { %v621_v38 = vrot.slane %v620_v33, 4 }
 0x46d   :  { %v622_v28 = vadd.f32 %v621_v38, %v620_v33 }
 0x46f   :  { %v623_v26 = vrot.slane %v622_v28, 2 }
 0x471   :  { %v624_v49 = vadd.f32 %v623_v26, %v622_v28 }
 0x473   :  { %v625_v3 = vrot.slane %v624_v49, 1 }
 0x475   :  { %v626_v46 = vadd.f32 %v625_v3, %v624_v49 }
 0x477   :  { %v1742_v4 = vadd.f32 %v626_v46, %v1516_v11 }
 0x479   :  { %v631_v32 = vrot.slane %v1742_v4, %v1511_v10 }
 0x47b   :  { %v632_v53 = vmul.f32 %v631_v32, %v1522_v14  ;;  %v633_v54 = vmul.f32 %v631_v32, %v1528_v18  ;;  %v634_v55 = vmul.f32 %v631_v32, %v1532_v21  ;;  %v635_v57 = vmul.f32 %v631_v32, %v1534_v22 }
 0x47d   :  { %v636_v33 = vadd.f32 %v632_v53, %v1520_v13  ;;  %v637_v60 = vadd.f32 %v633_v54, %v1526_v17  ;;  %v638_v62 = vadd.f32 %v634_v55, %v1538_v25  ;;  %v639_v11 = vadd.f32 %v635_v57, %v1541_v27 }
 0x47f   :  { %1412 = vtanh.f32 %v636_v33 }
 0x480   :  { %1414 = vtanh.f32 %v637_v60 }
 0x481   :  { %1416 = vtanh.f32 %v638_v62 }
 0x482   :  { %1418 = vtanh.f32 %v639_v11 }
 0x489   :  { %v1413_v46 = vpop.eup %1412 }
 0x48a   :  { %v1415_v14 = vpop.eup %1414  ;;  %v741_v26 = vmul.f32 %v1413_v46, %v1413_v46 }
 0x48b   :  { %v1417_v63 = vpop.eup %1416  ;;  %v1326_v18 = vpack.c.bf16 %v1415_v14, %v1413_v46 }
 0x48c   :  { %v1419_v0 = vpop.eup %1418  ;;  %v745_v53 = vsub.f32 1.0, %v741_v26  ;;  %v743_v54 = vmul.f32 %v1417_v63, %v1417_v63 }
 0x48d   :  { %1327 = vmatprep.subr.bf16.mxu0 %v1326_v18  ;;  %v1330_v21 = vpack.c.bf16 %v1419_v0, %v1417_v63  ;;  %v744_v3 = vmul.f32 %v1419_v0, %v1419_v0 }
 0x48e   :  { %1329 = vmatpush3.bf16.msra.mxu0 %v1326_v18 }
 0x48f   :  { %1331 = vmatprep.subr.bf16.mxu0 %v1330_v21 }
 0x492   :  { %1333 = vmatpush3.bf16.msra.mxu0 %v1330_v21 }
 0x495   :  { %1247 = vmatmul.mubr.msk.f32.vlgmr.msra.gmra.mrb[8].mxu0 %vm155_vm0, %v1559_v35 }
 0x496   :  { %1249 = vmatprep.mubr.msk.f32.mxu0 %vm155_vm0, %v1564_v36 }
 0x499   :  { %1250 = vmatmul.mubr.msk.f32.gmra.mrb[10].mxu0 %vm155_vm0, %v1573_v37 }
 0x49a   :  { %1274 = vmatprep.mubr.msk.f32.mxu0 %vm155_vm0, %v1628_v16 }
 0x568   :  { %v1248_v13 = vpop.f32.mrb[8].mxu0 }
 0x569   :  { %v716_v17 = vadd.f32 %v1248_v13, %v1596_v43  ;;  %v710_v22 = vpop.f32.mrb[9].mxu0 }
 0x56a   :  { %v711_v25 = vadd.f32 %v710_v22, %v1592_v41 }
 0x56b   :  { %1420 = vtanh.f32 %v716_v17 }
 0x56c   :  { %1422 = vtanh.f32 %v711_v25  ;;  %v1251_v27 = vpop.f32.mrb[10].mxu0 }
 0x56d   :  { %v726_v35 = vadd.f32 %v1251_v27, %v1600_v48  ;;  %v720_v1 = vpop.f32.mrb[11].mxu0 }
 0x56e   :  { %v721_v36 = vadd.f32 %v720_v1, %v1594_v42  ;;  %v742_v42 = vmul.f32 %v1415_v14, %v1415_v14 }
 0x56f   :  { %1424 = vtanh.f32 %v726_v35 }
 0x570   :  { %1426 = vtanh.f32 %v721_v36  ;;  %v746_v49 = vsub.f32 1.0, %v742_v42 }
 0x575   :  { %v1421_v37 = vpop.eup %1420 }
 0x576   :  { %v1423_v19 = vpop.eup %1422  ;;  %v734_v20 = vmul.f32 %v1421_v37, %v1421_v37 }
 0x577   :  { %v733_v16 = vmul.f32 %v1423_v19, %v1423_v19 }
 0x578   :  { %v738_v23 = vsub.f32 1.0, %v734_v20 }
 0x579   :  { %v1425_v24 = vpop.eup %1424  ;;  %v737_v43 = vsub.f32 1.0, %v733_v16 }
 0x57a   :  { %v1427_v2 = vpop.eup %1426  ;;  %v736_v31 = vmul.f32 %v1425_v24, %v1425_v24 }
 0x57b   :  { %v735_v41 = vmul.f32 %v1427_v2, %v1427_v2  ;;  %v1334_v29 = vpack.c.bf16 %v738_v23, %v737_v43 }
 0x57c   :  { %v740_v38 = vsub.f32 1.0, %v736_v31 }
 0x57d   :  { %v739_v28 = vsub.f32 1.0, %v735_v41  ;;  %1335 = vmatprep.subr.bf16.mxu1 %v1334_v29 }
 0x57e   :  { %1337 = vmatpush3.bf16.msra.mxu1 %v1334_v29 }
 0x57f   :  { %v1338_v48 = vpack.c.bf16 %v740_v38, %v739_v28 }
 0x581   :  { %1339 = vmatprep.subr.bf16.mxu1 %v1338_v48 }
 0x582   :  { %1341 = vmatpush3.bf16.msra.mxu1 %v1338_v48 }
 0x585   :  { %1261 = vmatmul.mubr.msk.f32.vlgmr.msra.gmra.mrb[8].mxu1 %vm155_vm0, %v1607_v9  ;;  %v748_v9 = vsub.f32 1.0, %v744_v3 }
 0x586   :  { %1263 = vmatprep.mubr.msk.f32.mxu1 %vm155_vm0, %v1612_v12  ;;  %v747_v12 = vsub.f32 1.0, %v743_v54 }
 0x589   :  { %1264 = vmatmul.mubr.msk.f32.gmra.mrb[10].mxu1 %vm155_vm0, %v1621_v15 }
 0x58a   :  { %1288 = vmatprep.mubr.msk.f32.mxu1 %vm155_vm0, %v1702_v30 }
 0x658   :  { %v1262_v32 = vpop.f32.mrb[8].mxu1 }
 0x659   :  { %v835_v55 = vmul.f32 %v1262_v32, %v746_v49  ;;  %v815_v57 = vpop.f32.mrb[9].mxu1  ;;  %v1816_v49 = vld [vmem:[#allocation3_spill] sm:$0xff] }
 0x65a   :  { %v834_v33 = vmul.f32 %v815_v57, %v745_v53 }
 0x65c   :  { %v838_v60 = vadd.f32 %v835_v55, %v834_v33  ;;  %v1265_v62 = vpop.f32.mrb[10].mxu1 }
 0x65d   :  { %v837_v11 = vmul.f32 %v1265_v62, %v748_v9  ;;  %v825_v18 = vpop.f32.mrb[11].mxu1 }
 0x65e   :  { %v836_v15 = vmul.f32 %v825_v18, %v747_v12 }
 0x660   :  { %v839_v21 = vadd.f32 %v838_v60, %v836_v15 }
 0x662   :  { %v840_v13 = vadd.f32 %v839_v21, %v837_v11 }
 0x664   :  { %v841_v30 = vrot.slane %v840_v13, 4 }
 0x666   :  { %v842_v14 = vadd.f32 %v841_v30, %v840_v13 }
 0x668   :  { %v843_v46 = vrot.slane %v842_v14, 2 }
 0x66a   :  { %v844_v17 = vadd.f32 %v843_v46, %v842_v14 }
 0x66c   :  { %v845_v0 = vrot.slane %v844_v17, 1 }
 0x66e   :  { %v846_v22 = vadd.f32 %v845_v0, %v844_v17 }
 0x670   :  { %v847_v63 = vadd.f32 %v846_v22, %v1660_v59 }
 0x672   :  { %v851_v25 = vrot.slane %v847_v63, %v1511_v10  ;;  %1068 = vst [vmem:[%s1810_s3] sm:$0x1] %v847_v63 }
 0x674   :  { %v852_v27 = vmul.f32 %v851_v25, %v1651_v52  ;;  %v853_v35 = vmul.f32 %v851_v25, %v1645_v7  ;;  %v854_v1 = vmul.f32 %v851_v25, %v1649_v51  ;;  %v855_v36 = vmul.f32 %v851_v25, %v1656_v56 }
 0x676   :  { %v856_v37 = vadd.f32 %v852_v27, %v1647_v47  ;;  %v857_v19 = vadd.f32 %v853_v35, %v1658_v58  ;;  %v858_v59 = vadd.f32 %v854_v1, %v1670_v8  ;;  %v859_v10 = vadd.f32 %v855_v36, %v1664_v61 }
 0x678   :  { %1428 = vtanh.f32 %v856_v37 }
 0x679   :  { %1430 = vtanh.f32 %v857_v19 }
 0x67a   :  { %1432 = vtanh.f32 %v858_v59 }
 0x67b   :  { %1434 = vtanh.f32 %v859_v10 }
 0x682   :  { %v1429_v20 = vpop.eup %1428 }
 0x683   :  { %v1431_v52 = vpop.eup %1430  ;;  %v961_v32 = vmul.f32 %v1429_v20, %v1429_v20 }
 0x684   :  { %v1433_v16 = vpop.eup %1432  ;;  %v1342_v7 = vpack.c.bf16 %v1431_v52, %v1429_v20  ;;  %v962_v3 = vmul.f32 %v1431_v52, %v1431_v52 }
 0x685   :  { %v1435_v23 = vpop.eup %1434  ;;  %v965_v57 = vsub.f32 1.0, %v961_v32  ;;  %v963_v33 = vmul.f32 %v1433_v16, %v1433_v16 }
 0x686   :  { %1343 = vmatprep.subr.bf16.mxu0 %v1342_v7  ;;  %v1346_v51 = vpack.c.bf16 %v1435_v23, %v1433_v16  ;;  %v966_v53 = vsub.f32 1.0, %v962_v3  ;;  %v964_v54 = vmul.f32 %v1435_v23, %v1435_v23 }
 0x687   :  { %1345 = vmatpush3.bf16.msra.mxu0 %v1342_v7 }
 0x688   :  { %1347 = vmatprep.subr.bf16.mxu0 %v1346_v51  ;;  %v968_v12 = vsub.f32 1.0, %v964_v54 }
 0x68b   :  { %1349 = vmatpush3.bf16.msra.mxu0 %v1346_v51 }
 0x68e   :  { %1275 = vmatmul.mubr.msk.f32.vlgmr.msra.gmra.mrb[12].mxu0 %vm155_vm0, %v1679_v5 }
 0x68f   :  { %1277 = vmatprep.mubr.msk.f32.mxu0 %vm155_vm0, %v1684_v34 }
 0x692   :  { %1278 = vmatmul.mubr.msk.f32.gmra.mrb[14].mxu0 %vm155_vm0, %v1693_v39 }
 0x761   :  { %v1276_v47 = vpop.f32.mrb[12].mxu0 }
 0x762   :  { %v936_v56 = vadd.f32 %v1276_v47, %v1708_v44  ;;  %v930_v58 = vpop.f32.mrb[13].mxu0 }
 0x763   :  { %v931_v61 = vadd.f32 %v930_v58, %v1706_v40 }
 0x764   :  { %1436 = vtanh.f32 %v936_v56 }
 0x765   :  { %1438 = vtanh.f32 %v931_v61  ;;  %v1279_v8 = vpop.f32.mrb[14].mxu0 }
 0x766   :  { %v946_v24 = vadd.f32 %v1279_v8, %v1712_v6  ;;  %v940_v43 = vpop.f32.mrb[15].mxu0 }
 0x767   :  { %v941_v5 = vadd.f32 %v940_v43, %v1714_v50  ;;  %v1815_v50 = vld [vmem:[#allocation2_spill] sm:$0xff] }
 0x768   :  { %1440 = vtanh.f32 %v946_v24 }
 0x769   :  { %1442 = vtanh.f32 %v941_v5 }
 0x76e   :  { %v1437_v34 = vpop.eup %1436 }
 0x76f   :  { %v1439_v2 = vpop.eup %1438  ;;  %v954_v31 = vmul.f32 %v1437_v34, %v1437_v34 }
 0x770   :  { %v953_v39 = vmul.f32 %v1439_v2, %v1439_v2 }
 0x771   :  { %v958_v41 = vsub.f32 1.0, %v954_v31 }
 0x772   :  { %v1441_v29 = vpop.eup %1440  ;;  %v957_v44 = vsub.f32 1.0, %v953_v39 }
 0x773   :  { %v1443_v38 = vpop.eup %1442  ;;  %v956_v28 = vmul.f32 %v1441_v29, %v1441_v29 }
 0x774   :  { %v955_v40 = vmul.f32 %v1443_v38, %v1443_v38  ;;  %v1350_v48 = vpack.c.bf16 %v958_v41, %v957_v44 }
 0x775   :  { %v960_v42 = vsub.f32 1.0, %v956_v28 }
 0x776   :  { %v959_v26 = vsub.f32 1.0, %v955_v40  ;;  %1351 = vmatprep.subr.bf16.mxu1 %v1350_v48 }
 0x777   :  { %1353 = vmatpush3.bf16.msra.mxu1 %v1350_v48 }
 0x778   :  { %v1354_v6 = vpack.c.bf16 %v960_v42, %v959_v26 }
 0x77a   :  { %1355 = vmatprep.subr.bf16.mxu1 %v1354_v6 }
 0x77b   :  { %1357 = vmatpush3.bf16.msra.mxu1 %v1354_v6 }
 0x77e   :  { %1289 = vmatmul.mubr.msk.f32.vlgmr.msra.gmra.mrb[12].mxu1 %vm155_vm0, %v1721_v45  ;;  %v967_v45 = vsub.f32 1.0, %v963_v33 }
 0x77f   :  { %1291 = vmatprep.mubr.msk.f32.mxu1 %vm155_vm0, %v1815_v50 }
 0x782   :  { %1292 = vmatmul.mubr.msk.f32.gmra.mrb[14].mxu1 %vm155_vm0, %v1816_v49 }
 0x851   :  { %v1290_v55 = vpop.f32.mrb[12].mxu1 }
 0x852   :  { %v1055_v9 = vmul.f32 %v1290_v55, %v966_v53  ;;  %v1035_v60 = vpop.f32.mrb[13].mxu1 }
 0x853   :  { %v1054_v62 = vmul.f32 %v1035_v60, %v965_v57 }
 0x855   :  { %v1058_v11 = vadd.f32 %v1055_v9, %v1054_v62  ;;  %v1293_v18 = vpop.f32.mrb[14].mxu1 }
 0x856   :  { %v1057_v15 = vmul.f32 %v1293_v18, %v968_v12  ;;  %v1045_v21 = vpop.f32.mrb[15].mxu1 }
 0x857   :  { %v1056_v13 = vmul.f32 %v1045_v21, %v967_v45 }
 0x859   :  { %v1059_v30 = vadd.f32 %v1058_v11, %v1056_v13 }
 0x85b   :  { %v1060_v14 = vadd.f32 %v1059_v30, %v1057_v15 }
 0x85d   :  { %v1061_v46 = vrot.slane %v1060_v14, 4 }
 0x85f   :  { %v1062_v17 = vadd.f32 %v1061_v46, %v1060_v14 }
 0x861   :  { %v1063_v0 = vrot.slane %v1062_v17, 2 }
 0x863   :  { %v1064_v22 = vadd.f32 %v1063_v0, %v1062_v17 }
 0x865   :  { %v1065_v63 = vrot.slane %v1064_v22, 1 }
 0x867   :  { %v1066_v25 = vadd.f32 %v1065_v63, %v1064_v22 }
 0x869   :  { %v1067_v27 = vadd.f32 %v1066_v25, %v1742_v4 }
 0x86b   :  { %1069 = vst [vmem:[%s1810_s3 + $0x1] sm:$0x1] %v1067_v27 }

</bundles_post_ra>
